<compile_context>
chip_gen: v6e
topology: v6e:2x2x1
jax: 0.10.0
libtpu: 0.0.40
codegen_flags: <defaults>
</compile_context>

<pallas_src>
import functools

import jax
import jax.numpy as jnp
import numpy as np
from jax.experimental import pallas as pl
from jax.experimental.pallas import tpu as pltpu

CLASS_WEIGHTS = (0.1, 1.0, 1.0, 1.0)
Q = 0.8
LANES = 128


# ----------------------------------------------------------------------------
# tiling helpers
# ----------------------------------------------------------------------------
@functools.lru_cache(maxsize=1)
def _ts_target():
    """Generation-aware sublane-row tile target."""
    try:
        kind = jax.devices()[0].device_kind.lower()
    except Exception:  # pragma: no cover - no device available
        return 1024
    if "v5" in kind or "v6" in kind:
        # 128 MiB VMEM/TC and HBM-bound: bigger tiles amortize the ~0.35us/step
        # pipeline overhead.
        return 2048
    # v7x (64 MiB VMEM/TC, compute-bound) and unknown generations: stay modest.
    return 1024


def _tiling(hw, ts_hint=None):
    """Returns (s, ts, num_t, p, s_pad): rows, tile rows, #tiles, fold rows, padded rows."""
    assert hw % LANES == 0, "H*W must be a multiple of 128"
    s = hw // LANES
    target = int(ts_hint) if ts_hint is not None else _ts_target()
    if s <= target:
        ts = s                       # full spatial extent in one tile
    else:
        ts = max(8, target - (target % 8))   # sublane-aligned tile, ceil-div grid
    num_t = int(pl.cdiv(s, ts))
    s_pad = num_t * ts               # wrapper pads the ragged tail (rare case)
    p = 8 if ts % 8 == 0 else ts     # sublane height of the per-tile partial sums
    return s, ts, num_t, p, s_pad


def _vmem_limit(block_bytes, temp_bytes):
    # 2x (double-buffered) pipeline blocks + live elementwise temporaries + slack,
    # floored at 32 MiB (v5e's default scoped VMEM is only 16 MiB) and capped at
    # 64 MiB (v7x physical VMEM per TC).
    need = 2 * int(block_bytes) + int(temp_bytes) + (4 << 20)
    return int(min(max(need, 32 << 20), 64 << 20))


def _normalize_inputs(x, reference=None):
    if x.dtype != jnp.float32 and x.dtype != jnp.bfloat16:
        x = x.astype(jnp.float32)
    if reference is not None and not jnp.issubdtype(reference.dtype, jnp.integer):
        reference = reference.astype(jnp.int32)
    return x, reference


# ----------------------------------------------------------------------------
# model head only (steps == 1 path): 1x1 conv as unrolled VPU FMAs
# ----------------------------------------------------------------------------
def _conv_kernel(w_ref, b_ref, x_ref, o_ref, *, cin, cout):
    # read in native dtype, upcast per channel (free VPU convert, f32 accumulation)
    xs = [x_ref[0, k, :, :].astype(jnp.float32) for k in range(cin)]
    for c in range(cout):
        acc = xs[0] * w_ref[c * cin]
        for k in range(1, cin):
            acc = acc + xs[k] * w_ref[c * cin + k]
        o_ref[0, c, :, :] = (acc + b_ref[c]).astype(o_ref.dtype)


def conv1x1(x, w, b, ts_hint=None):
    """Pointwise (1x1) conv head: the `model(x)` of the GCE module."""
    x, _ = _normalize_inputs(x)
    n, cin, h, wd = x.shape
    cout = w.shape[0]
    out_dtype = x.dtype                      # logits follow the activation dtype
    hw = h * wd
    s, ts, num_t, _, s_pad = _tiling(hw, ts_hint)

    x4 = x.reshape(n, cin, s, LANES)
    if s_pad != s:                           # rare ragged case only
        x4 = jnp.pad(x4, ((0, 0), (0, 0), (0, s_pad - s), (0, 0)))

    w_flat = w.reshape(-1).astype(jnp.float32)
    b_flat = b.reshape(-1).astype(jnp.float32)

    xb = x4.dtype.itemsize
    ob = jnp.dtype(out_dtype).itemsize
    block_bytes = cin * ts * LANES * xb + cout * ts * LANES * ob
    temp_bytes = (cin + cout + 2) * ts * LANES * 4

    smem = pl.BlockSpec(memory_space=pltpu.MemorySpace.SMEM)
    out = pl.pallas_call(
        functools.partial(_conv_kernel, cin=cin, cout=cout),
        out_shape=jax.ShapeDtypeStruct((n, cout, s_pad, LANES), out_dtype),
        grid_spec=pltpu.PrefetchScalarGridSpec(
            num_scalar_prefetch=0,
            grid=(n, num_t),
            in_specs=[
                smem,  # flattened conv weights (SMEM scalars)
                smem,  # conv bias
                pl.BlockSpec((1, cin, ts, LANES), lambda i, t: (i, 0, t, 0)),
            ],
            out_specs=pl.BlockSpec((1, cout, ts, LANES), lambda i, t: (i, 0, t, 0)),
        ),
        compiler_params=pltpu.CompilerParams(
            dimension_semantics=("parallel", "parallel"),
            vmem_limit_bytes=_vmem_limit(block_bytes, temp_bytes),
        ),
    )(w_flat, b_flat, x4)
    if s_pad != s:
        out = out[:, :, :s, :]
    return out.reshape(n, cout, h, wd)


# ----------------------------------------------------------------------------
# fused forward + losses (what forward_and_adapt computes each step)
# ----------------------------------------------------------------------------
def _fused_kernel(w_ref, b_ref, x_ref, ref_ref, logits_ref, part_ref,
                  *, cin, cout, q, class_weights, s, s_pad, ts, p, label_upcast):
    t = pl.program_id(1)

    # ---- 1x1 conv head: unrolled VPU FMAs (f32 logits stay live for the loss)
    xs = [x_ref[0, k, :, :].astype(jnp.float32) for k in range(cin)]
    logits = []
    for c in range(cout):
        acc = xs[0] * w_ref[c * cin]
        for k in range(1, cin):
            acc = acc + xs[k] * w_ref[c * cin + k]
        acc = acc + b_ref[c]
        logits.append(acc)
        logits_ref[0, c, :, :] = acc.astype(logits_ref.dtype)  # bf16 out when x is bf16

    # ---- stable softmax pieces, channel-unrolled (VPU max/add, EUP exp/log) --
    m = logits[0]
    for c in range(1, cout):
        m = jnp.maximum(m, logits[c])
    sumexp = jnp.exp(logits[0] - m)
    for c in range(1, cout):
        sumexp = sumexp + jnp.exp(logits[c] - m)
    lse = jnp.log(sumexp)

    # ---- GCE vs self-predicted (argmax) label: p_sel = max prob = exp(-lse) --
    gce_pix = (1.0 - jnp.exp(-q * lse)) * (1.0 / q)  # (TS, 128)

    # ---- weighted CE vs reference labels (class weights baked in) ------------
    ref = ref_ref[0, :, :]
    if label_upcast:                       # sub-32-bit labels: one convert per vreg
        ref = ref.astype(jnp.int32)
    logit_sel = logits[0]
    for c in range(1, cout):
        logit_sel = jnp.where(ref == c, logits[c], logit_sel)
    if len(set(class_weights[1:])) == 1:
        # (0.1, 1, 1, 1): 1 compare + 1 select instead of a 3-cmp / 3-select chain
        w_pix = jnp.where(ref == 0, jnp.float32(class_weights[0]),
                          jnp.float32(class_weights[1]))
    else:
        w_pix = jnp.full_like(m, class_weights[0])
        for c in range(1, cout):
            w_pix = jnp.where(ref == c, jnp.float32(class_weights[c]), w_pix)
    ce_pix = w_pix * ((m + lse) - logit_sel)  # w[ref] * (-log_softmax[ref])

    # ---- mask padded tail rows of the last (ragged) tile out of the loss sums
    if s_pad != s:
        row = t * ts + jax.lax.broadcasted_iota(jnp.int32, (ts, LANES), 0)
        valid = row < s
        gce_pix = jnp.where(valid, gce_pix, 0.0)
        ce_pix = jnp.where(valid, ce_pix, 0.0)
        w_pix = jnp.where(valid, w_pix, 0.0)

    # ---- per-tile lane-dense partial sums: (TS,128) -> (P,128) ---------------
    # unrolled static-slice accumulation: guaranteed pure VALU adds, no relayout
    def fold(v):
        if p == ts:
            return v
        acc2 = v[0:p, :]
        for g in range(1, ts // p):
            acc2 = acc2 + v[g * p:(g + 1) * p, :]
        return acc2

    # single merged partials block: [gce | ce | weight-sum] -> one DMA per step
    part_ref[0, 0, :, :] = fold(gce_pix)
    part_ref[0, 1, :, :] = fold(ce_pix)
    part_ref[0, 2, :, :] = fold(w_pix)


def gce_forward_and_losses(x, reference, w, b, q=Q, ts_hint=None):
    """One fused pass: logits (model output), GCE loss, bound (weighted CE) loss."""
    x, reference = _normalize_inputs(x, reference)
    n, cin, h, wd = x.shape
    cout = w.shape[0]
    assert cout == len(CLASS_WEIGHTS)
    out_dtype = x.dtype                      # logits follow the activation dtype
    hw = h * wd
    s, ts, num_t, p, s_pad = _tiling(hw, ts_hint)

    x4 = x.reshape(n, cin, s, LANES)               # native dtype, upcast in-kernel
    ref3 = reference.reshape(n, s, LANES)          # native integer dtype, no wrapper cast
    if s_pad != s:                                 # rare ragged case only
        x4 = jnp.pad(x4, ((0, 0), (0, 0), (0, s_pad - s), (0, 0)))
        ref3 = jnp.pad(ref3, ((0, 0), (0, s_pad - s), (0, 0)))
    w_flat = w.reshape(-1).astype(jnp.float32)
    b_flat = b.reshape(-1).astype(jnp.float32)

    xb = x4.dtype.itemsize
    rb = ref3.dtype.itemsize
    ob = jnp.dtype(out_dtype).itemsize
    block_bytes = (cin * xb + cout * ob + rb) * ts * LANES + 3 * p * LANES * 4
    temp_bytes = 14 * ts * LANES * 4               # xs, logits, m, lse, loss temporaries

    smem = pl.BlockSpec(memory_space=pltpu.MemorySpace.SMEM)
    part_shape = jax.ShapeDtypeStruct((n, 3 * num_t, p, LANES), jnp.float32)
    part_spec = pl.BlockSpec((1, 3, p, LANES), lambda i, t: (i, t, 0, 0))

    # NOTE(v7x): both grid axes are "parallel" so the (n, num_t) grid splits
    # across the two TensorCores; keep n * num_t >= 2 for full occupancy.
    logits4, parts = pl.pallas_call(
        functools.partial(_fused_kernel, cin=cin, cout=cout, q=q,
                          class_weights=tuple(CLASS_WEIGHTS),
                          s=s, s_pad=s_pad, ts=ts, p=p,
                          label_upcast=rb < 4),
        out_shape=(
            jax.ShapeDtypeStruct((n, cout, s_pad, LANES), out_dtype),
            part_shape,
        ),
        grid_spec=pltpu.PrefetchScalarGridSpec(
            num_scalar_prefetch=0,
            grid=(n, num_t),
            in_specs=[
                smem,  # flattened conv weights (SMEM scalars)
                smem,  # conv bias
                pl.BlockSpec((1, cin, ts, LANES), lambda i, t: (i, 0, t, 0)),
                pl.BlockSpec((1, ts, LANES), lambda i, t: (i, t, 0)),
            ],
            out_specs=(
                pl.BlockSpec((1, cout, ts, LANES), lambda i, t: (i, 0, t, 0)),
                part_spec,
            ),
        ),
        compiler_params=pltpu.CompilerParams(
            dimension_semantics=("parallel", "parallel"),
            vmem_limit_bytes=_vmem_limit(block_bytes, temp_bytes),
        ),
    )(w_flat, b_flat, x4, ref3)

    if s_pad != s:
        logits4 = logits4[:, :, :s, :]
    outputs = logits4.reshape(n, cout, h, wd)

    parts = parts.reshape(n, num_t, 3, p, LANES)
    gce_loss = jnp.sum(parts[:, :, 0]) / jnp.float32(n * hw)   # mean over all pixels
    bound_loss = jnp.sum(parts[:, :, 1]) / jnp.sum(parts[:, :, 2])  # torch weighted-CE 'mean'
    return outputs, gce_loss, bound_loss


# ----------------------------------------------------------------------------
# GCE.forward semantics
# ----------------------------------------------------------------------------
def gce_forward(x, reference, conv_w, conv_b, steps=1):
    """steps == 1 -> (model(x), [False, 0, 0, 0]); steps > 1 uses the fused loss pass."""
    if steps == 1:
        return conv1x1(x, conv_w, conv_b), [False, 0, 0, 0]
    outputs, loss_gce, loss_bound = gce_forward_and_losses(x, reference, conv_w, conv_b)
    loss_track = [loss_gce, loss_bound]
    # TODO(synk): multi-step adaptation (backward + optimizer.step + state reset)
    # is a host-side training loop and is not expressible as a Pallas kernel.
    return outputs, [False, loss_track, loss_track, 0]


# ----------------------------------------------------------------------------
# plain-JAX reference for verification
# ----------------------------------------------------------------------------
def ref_forward_and_losses(x, reference, conv_w, conv_b, q=Q):
    out = (jnp.einsum("oc,nchw->nohw", conv_w, x.astype(jnp.float32),
                      precision=jax.lax.Precision.HIGHEST)
           + conv_b[None, :, None, None])
    probs = jax.nn.softmax(out, axis=1)
    p_sel = jnp.max(probs, axis=1)  # prob at the argmax (self-predicted) label
    gce_loss = jnp.mean((1.0 - p_sel ** q) / q)
    logp = jax.nn.log_softmax(out, axis=1)
    nll = -jnp.take_along_axis(logp, reference[:, None], axis=1)[:, 0]
    wts = jnp.asarray(CLASS_WEIGHTS, jnp.float32)[reference]
    bound_loss = jnp.sum(wts * nll) / jnp.sum(wts)
    return out, gce_loss, bound_loss


if __name__ == "__main__":
    key = jax.random.PRNGKey(0)
    N, Cin, Cout, H, W = 2, 4, 4, 16, 16
    kx, kw, kb, kr = jax.random.split(key, 4)

    x = jax.random.normal(kx, (N, Cin, H, W), jnp.float32)
    conv_w = 0.5 * jax.random.normal(kw, (Cout, Cin), jnp.float32)
    conv_b = 0.1 * jax.random.normal(kb, (Cout,), jnp.float32)
    reference = jax.random.randint(kr, (N, H, W), 0, Cout, dtype=jnp.int32)

    # --- steps == 1 path (exact GCE.forward semantics: just the model head) ---
    outputs1, flags = gce_forward(x, reference, conv_w, conv_b, steps=1)

    # --- fused forward + losses, f32 activations / int32 labels ---------------
    outputs, loss_gce, loss_bound = gce_forward_and_losses(x, reference, conv_w, conv_b)
    jax.block_until_ready((outputs1, outputs, loss_gce, loss_bound))

    out_ref, gce_ref_v, bound_ref_v = ref_forward_and_losses(x, reference, conv_w, conv_b)
    np.testing.assert_allclose(np.asarray(outputs1), np.asarray(out_ref), rtol=1e-5, atol=1e-5)
    np.testing.assert_allclose(np.asarray(outputs), np.asarray(out_ref), rtol=1e-5, atol=1e-5)
    np.testing.assert_allclose(float(loss_gce), float(gce_ref_v), rtol=1e-5, atol=1e-6)
    np.testing.assert_allclose(float(loss_bound), float(bound_ref_v), rtol=1e-5, atol=1e-6)

    # --- bf16 activations + int8 labels (reduced HBM-traffic path) ------------
    x_bf = x.astype(jnp.bfloat16)
    ref_i8 = reference.astype(jnp.int8)
    out_bf, gce_bf, bound_bf = gce_forward_and_losses(x_bf, ref_i8, conv_w, conv_b)
    jax.block_until_ready((out_bf, gce_bf, bound_bf))
    assert out_bf.dtype == jnp.bfloat16
    out_ref_bf, gce_ref_bf, bound_ref_bf = ref_forward_and_losses(x_bf, reference, conv_w, conv_b)
    np.testing.assert_allclose(np.asarray(out_bf, dtype=np.float32), np.asarray(out_ref_bf),
                               rtol=2e-2, atol=2e-2)          # logits rounded to bf16
    np.testing.assert_allclose(float(gce_bf), float(gce_ref_bf), rtol=1e-4, atol=1e-5)
    np.testing.assert_allclose(float(bound_bf), float(bound_ref_bf), rtol=1e-4, atol=1e-5)

    # --- ragged spatial size: ceil-div grid + padded/masked last tile ---------
    H2, W2 = 16, 88  # H*W = 1408 -> s = 11 rows; ts_hint=8 forces 2 tiles, last one ragged
    kx2, kr2 = jax.random.split(kr)
    x2 = jax.random.normal(kx2, (N, Cin, H2, W2), jnp.float32)
    ref2 = jax.random.randint(kr2, (N, H2, W2), 0, Cout, dtype=jnp.int32)
    out2, gce2, bound2 = gce_forward_and_losses(x2, ref2, conv_w, conv_b, ts_hint=8)
    jax.block_until_ready((out2, gce2, bound2))
    out2_ref, gce2_ref, bound2_ref = ref_forward_and_losses(x2, ref2, conv_w, conv_b)
    np.testing.assert_allclose(np.asarray(out2), np.asarray(out2_ref), rtol=1e-5, atol=1e-5)
    np.testing.assert_allclose(float(gce2), float(gce2_ref), rtol=1e-5, atol=1e-6)
    np.testing.assert_allclose(float(bound2), float(bound2_ref), rtol=1e-5, atol=1e-6)

    print("KERNEL_OK")
</pallas_src>

<mosaic_0001>
module attributes {stable_mosaic.version = 11 : i64} {
  func.func @_conv_kernel(%arg0: i32, %arg1: i32, %arg2: memref<16xf32, #tpu.memory_space<smem>>, %arg3: memref<4xf32, #tpu.memory_space<smem>>, %arg4: memref<1x4x2x128xf32, #tpu.memory_space<vmem>>, %arg5: memref<1x4x2x128xf32, #tpu.memory_space<vmem>>) attributes {dimension_semantics = [#tpu.dimension_semantics<parallel>, #tpu.dimension_semantics<parallel>], iteration_bounds = array<i64: 2, 1>, scalar_prefetch = 0 : i64, scratch_operands = 0 : i64, tpu.core_type = #tpu.core_type<tc>, window_params = [{transform_indices = @transform_0, window_bounds = array<i64: 16>}, {transform_indices = @transform_1, window_bounds = array<i64: 4>}, {transform_indices = @transform_2, window_bounds = array<i64: 1, 4, 2, 128>}, {transform_indices = @transform_3, window_bounds = array<i64: 1, 4, 2, 128>}]} {
    %c0 = arith.constant 0 : index
    %c0_0 = arith.constant 0 : index
    %c0_1 = arith.constant 0 : index
    %c0_2 = arith.constant 0 : index
    %0 = vector.load %arg4[%c0, %c0_0, %c0_1, %c0_2] : memref<1x4x2x128xf32, #tpu.memory_space<vmem>>, vector<1x1x2x128xf32>
    %1 = vector.shape_cast %0 : vector<1x1x2x128xf32> to vector<2x128xf32>
    %c0_3 = arith.constant 0 : index
    %c1 = arith.constant 1 : index
    %c0_4 = arith.constant 0 : index
    %c0_5 = arith.constant 0 : index
    %2 = vector.load %arg4[%c0_3, %c1, %c0_4, %c0_5] : memref<1x4x2x128xf32, #tpu.memory_space<vmem>>, vector<1x1x2x128xf32>
    %3 = vector.shape_cast %2 : vector<1x1x2x128xf32> to vector<2x128xf32>
    %c0_6 = arith.constant 0 : index
    %c2 = arith.constant 2 : index
    %c0_7 = arith.constant 0 : index
    %c0_8 = arith.constant 0 : index
    %4 = vector.load %arg4[%c0_6, %c2, %c0_7, %c0_8] : memref<1x4x2x128xf32, #tpu.memory_space<vmem>>, vector<1x1x2x128xf32>
    %5 = vector.shape_cast %4 : vector<1x1x2x128xf32> to vector<2x128xf32>
    %c0_9 = arith.constant 0 : index
    %c3 = arith.constant 3 : index
    %c0_10 = arith.constant 0 : index
    %c0_11 = arith.constant 0 : index
    %6 = vector.load %arg4[%c0_9, %c3, %c0_10, %c0_11] : memref<1x4x2x128xf32, #tpu.memory_space<vmem>>, vector<1x1x2x128xf32>
    %7 = vector.shape_cast %6 : vector<1x1x2x128xf32> to vector<2x128xf32>
    %c0_12 = arith.constant 0 : index
    %8 = memref.load %arg2[%c0_12] : memref<16xf32, #tpu.memory_space<smem>>
    %9 = vector.broadcast %8 : f32 to vector<2x128xf32>
    %10 = arith.mulf %1, %9 : vector<2x128xf32>
    %c1_13 = arith.constant 1 : index
    %11 = memref.load %arg2[%c1_13] : memref<16xf32, #tpu.memory_space<smem>>
    %12 = vector.broadcast %11 : f32 to vector<2x128xf32>
    %13 = arith.mulf %3, %12 : vector<2x128xf32>
    %14 = arith.addf %10, %13 : vector<2x128xf32>
    %c2_14 = arith.constant 2 : index
    %15 = memref.load %arg2[%c2_14] : memref<16xf32, #tpu.memory_space<smem>>
    %16 = vector.broadcast %15 : f32 to vector<2x128xf32>
    %17 = arith.mulf %5, %16 : vector<2x128xf32>
    %18 = arith.addf %14, %17 : vector<2x128xf32>
    %c3_15 = arith.constant 3 : index
    %19 = memref.load %arg2[%c3_15] : memref<16xf32, #tpu.memory_space<smem>>
    %20 = vector.broadcast %19 : f32 to vector<2x128xf32>
    %21 = arith.mulf %7, %20 : vector<2x128xf32>
    %22 = arith.addf %18, %21 : vector<2x128xf32>
    %c0_16 = arith.constant 0 : index
    %23 = memref.load %arg3[%c0_16] : memref<4xf32, #tpu.memory_space<smem>>
    %24 = vector.broadcast %23 : f32 to vector<2x128xf32>
    %25 = arith.addf %22, %24 : vector<2x128xf32>
    %c0_17 = arith.constant 0 : index
    %c0_18 = arith.constant 0 : index
    %c0_19 = arith.constant 0 : index
    %c0_20 = arith.constant 0 : index
    %26 = vector.load %arg5[%c0_17, %c0_18, %c0_19, %c0_20] : memref<1x4x2x128xf32, #tpu.memory_space<vmem>>, vector<1x1x2x128xf32>
    %27 = vector.shape_cast %26 : vector<1x1x2x128xf32> to vector<2x128xf32>
    %28 = vector.shape_cast %25 : vector<2x128xf32> to vector<1x1x2x128xf32>
    tpu.vector_store %arg5[%c0_17, %c0_18, %c0_19, %c0_20], %28 {strides = array<i32>} : memref<1x4x2x128xf32, #tpu.memory_space<vmem>>, vector<1x1x2x128xf32>,
    %c4 = arith.constant 4 : index
    %29 = memref.load %arg2[%c4] : memref<16xf32, #tpu.memory_space<smem>>
    %30 = vector.broadcast %29 : f32 to vector<2x128xf32>
    %31 = arith.mulf %1, %30 : vector<2x128xf32>
    %c5 = arith.constant 5 : index
    %32 = memref.load %arg2[%c5] : memref<16xf32, #tpu.memory_space<smem>>
    %33 = vector.broadcast %32 : f32 to vector<2x128xf32>
    %34 = arith.mulf %3, %33 : vector<2x128xf32>
    %35 = arith.addf %31, %34 : vector<2x128xf32>
    %c6 = arith.constant 6 : index
    %36 = memref.load %arg2[%c6] : memref<16xf32, #tpu.memory_space<smem>>
    %37 = vector.broadcast %36 : f32 to vector<2x128xf32>
    %38 = arith.mulf %5, %37 : vector<2x128xf32>
    %39 = arith.addf %35, %38 : vector<2x128xf32>
    %c7 = arith.constant 7 : index
    %40 = memref.load %arg2[%c7] : memref<16xf32, #tpu.memory_space<smem>>
    %41 = vector.broadcast %40 : f32 to vector<2x128xf32>
    %42 = arith.mulf %7, %41 : vector<2x128xf32>
    %43 = arith.addf %39, %42 : vector<2x128xf32>
    %c1_21 = arith.constant 1 : index
    %44 = memref.load %arg3[%c1_21] : memref<4xf32, #tpu.memory_space<smem>>
    %45 = vector.broadcast %44 : f32 to vector<2x128xf32>
    %46 = arith.addf %43, %45 : vector<2x128xf32>
    %c0_22 = arith.constant 0 : index
    %c1_23 = arith.constant 1 : index
    %c0_24 = arith.constant 0 : index
    %c0_25 = arith.constant 0 : index
    %47 = vector.load %arg5[%c0_22, %c1_23, %c0_24, %c0_25] : memref<1x4x2x128xf32, #tpu.memory_space<vmem>>, vector<1x1x2x128xf32>
    %48 = vector.shape_cast %47 : vector<1x1x2x128xf32> to vector<2x128xf32>
    %49 = vector.shape_cast %46 : vector<2x128xf32> to vector<1x1x2x128xf32>
    tpu.vector_store %arg5[%c0_22, %c1_23, %c0_24, %c0_25], %49 {strides = array<i32>} : memref<1x4x2x128xf32, #tpu.memory_space<vmem>>, vector<1x1x2x128xf32>,
    %c8 = arith.constant 8 : index
    %50 = memref.load %arg2[%c8] : memref<16xf32, #tpu.memory_space<smem>>
    %51 = vector.broadcast %50 : f32 to vector<2x128xf32>
    %52 = arith.mulf %1, %51 : vector<2x128xf32>
    %c9 = arith.constant 9 : index
    %53 = memref.load %arg2[%c9] : memref<16xf32, #tpu.memory_space<smem>>
    %54 = vector.broadcast %53 : f32 to vector<2x128xf32>
    %55 = arith.mulf %3, %54 : vector<2x128xf32>
    %56 = arith.addf %52, %55 : vector<2x128xf32>
    %c10 = arith.constant 10 : index
    %57 = memref.load %arg2[%c10] : memref<16xf32, #tpu.memory_space<smem>>
    %58 = vector.broadcast %57 : f32 to vector<2x128xf32>
    %59 = arith.mulf %5, %58 : vector<2x128xf32>
    %60 = arith.addf %56, %59 : vector<2x128xf32>
    %c11 = arith.constant 11 : index
    %61 = memref.load %arg2[%c11] : memref<16xf32, #tpu.memory_space<smem>>
    %62 = vector.broadcast %61 : f32 to vector<2x128xf32>
    %63 = arith.mulf %7, %62 : vector<2x128xf32>
    %64 = arith.addf %60, %63 : vector<2x128xf32>
    %c2_26 = arith.constant 2 : index
    %65 = memref.load %arg3[%c2_26] : memref<4xf32, #tpu.memory_space<smem>>
    %66 = vector.broadcast %65 : f32 to vector<2x128xf32>
    %67 = arith.addf %64, %66 : vector<2x128xf32>
    %c0_27 = arith.constant 0 : index
    %c2_28 = arith.constant 2 : index
    %c0_29 = arith.constant 0 : index
    %c0_30 = arith.constant 0 : index
    %68 = vector.load %arg5[%c0_27, %c2_28, %c0_29, %c0_30] : memref<1x4x2x128xf32, #tpu.memory_space<vmem>>, vector<1x1x2x128xf32>
    %69 = vector.shape_cast %68 : vector<1x1x2x128xf32> to vector<2x128xf32>
    %70 = vector.shape_cast %67 : vector<2x128xf32> to vector<1x1x2x128xf32>
    tpu.vector_store %arg5[%c0_27, %c2_28, %c0_29, %c0_30], %70 {strides = array<i32>} : memref<1x4x2x128xf32, #tpu.memory_space<vmem>>, vector<1x1x2x128xf32>,
    %c12 = arith.constant 12 : index
    %71 = memref.load %arg2[%c12] : memref<16xf32, #tpu.memory_space<smem>>
    %72 = vector.broadcast %71 : f32 to vector<2x128xf32>
    %73 = arith.mulf %1, %72 : vector<2x128xf32>
    %c13 = arith.constant 13 : index
    %74 = memref.load %arg2[%c13] : memref<16xf32, #tpu.memory_space<smem>>
    %75 = vector.broadcast %74 : f32 to vector<2x128xf32>
    %76 = arith.mulf %3, %75 : vector<2x128xf32>
    %77 = arith.addf %73, %76 : vector<2x128xf32>
    %c14 = arith.constant 14 : index
    %78 = memref.load %arg2[%c14] : memref<16xf32, #tpu.memory_space<smem>>
    %79 = vector.broadcast %78 : f32 to vector<2x128xf32>
    %80 = arith.mulf %5, %79 : vector<2x128xf32>
    %81 = arith.addf %77, %80 : vector<2x128xf32>
    %c15 = arith.constant 15 : index
    %82 = memref.load %arg2[%c15] : memref<16xf32, #tpu.memory_space<smem>>
    %83 = vector.broadcast %82 : f32 to vector<2x128xf32>
    %84 = arith.mulf %7, %83 : vector<2x128xf32>
    %85 = arith.addf %81, %84 : vector<2x128xf32>
    %c3_31 = arith.constant 3 : index
    %86 = memref.load %arg3[%c3_31] : memref<4xf32, #tpu.memory_space<smem>>
    %87 = vector.broadcast %86 : f32 to vector<2x128xf32>
    %88 = arith.addf %85, %87 : vector<2x128xf32>
    %c0_32 = arith.constant 0 : index
    %c3_33 = arith.constant 3 : index
    %c0_34 = arith.constant 0 : index
    %c0_35 = arith.constant 0 : index
    %89 = vector.load %arg5[%c0_32, %c3_33, %c0_34, %c0_35] : memref<1x4x2x128xf32, #tpu.memory_space<vmem>>, vector<1x1x2x128xf32>
    %90 = vector.shape_cast %89 : vector<1x1x2x128xf32> to vector<2x128xf32>
    %91 = vector.shape_cast %88 : vector<2x128xf32> to vector<1x1x2x128xf32>
    tpu.vector_store %arg5[%c0_32, %c3_33, %c0_34, %c0_35], %91 {strides = array<i32>} : memref<1x4x2x128xf32, #tpu.memory_space<vmem>>, vector<1x1x2x128xf32>,
    return
  }
  func.func @transform_0(%arg0: i32, %arg1: i32) -> i32 {
    %c0_i32 = arith.constant 0 : i32
    %c0_i32_0 = arith.constant 0 : i32
    return %c0_i32 : i32
  }
  func.func @transform_1(%arg0: i32, %arg1: i32) -> i32 {
    %c0_i32 = arith.constant 0 : i32
    %c0_i32_0 = arith.constant 0 : i32
    return %c0_i32 : i32
  }
  func.func @transform_2(%arg0: i32, %arg1: i32) -> (i32, i32, i32, i32) {
    %c0_i32 = arith.constant 0 : i32
    %c0_i32_0 = arith.constant 0 : i32
    %c0_i32_1 = arith.constant 0 : i32
    return %arg0, %c0_i32, %arg1, %c0_i32_0 : i32, i32, i32, i32
  }
  func.func @transform_3(%arg0: i32, %arg1: i32) -> (i32, i32, i32, i32) {
    %c0_i32 = arith.constant 0 : i32
    %c0_i32_0 = arith.constant 0 : i32
    %c0_i32_1 = arith.constant 0 : i32
    return %arg0, %c0_i32, %arg1, %c0_i32_0 : i32, i32, i32, i32
  }
}

</mosaic_0001>

<bundles_post_ra>
// kernel: tpu_custom_call.1
= control target key start
LH: loop header
LB: loop body
LE: loop exit
PB: predicated region body
PF: predicated region fallthrough
CT: control target
= control target key end

     0   :  { %s945_s0 = inlined_call_operand.hbm [shape: f32[16], index: 0, kind: input, shape index: {}]   ;;  %s946_s1 = inlined_call_operand.vmem [shape: f32[4], index: 1, kind: input, shape index: {}]   ;;  %s947_s2 = inlined_call_operand.hbm [shape: f32[2,4,2,128], index: 2, kind: input, shape index: {}]   ;;  %s948_s3 = inlined_call_operand.hbm [shape: f32[2,4,2,128], index: 3, kind: output, shape index: {}]  }
   0x1   :  { %950 = sst [smem:[#allocation14_spill]] %s945_s0 }
   0x2   :  { %8 = vsyncpa [#allocation5], 0 }
   0x3   :  { %9 = vsyncpa [#allocation6], 0 }
   0x4   :  { %10 = vsyncpa [#allocation3], 0 }
   0x5   :  { %12 = vsyncpa [#allocation3 + $0x1], 0 }
   0x6   :  { %13 = vsyncpa [#allocation4], 0 }
   0x7   :  { %15 = vsyncpa [#allocation4 + $0x1], 0  ;;  %s745_s12 = smov 0   ;;  %s747_s13 = smov 0  }
   0x8   :  { %s749_s14 = smov 0   ;;  %s751_s15 = smov 0  }
   0x9   :  { %s753_s16 = smov 0   ;;  %s755_s17 = smov 0  }
   0xa LB: > { %s441_s18 = sadd.s32 4294967295, %s715_s17   ;;  %s442_s19 = sadd.s32 4294967294, %s715_s17   ;;  %s715_s17 = sphi %s755_s17, %s21_s17   ;;  %s711_s16 = sphi %s753_s16, %s966_s16   ;;  %s707_s15 = sphi %s751_s15, %s965_s15   ;;  %s703_s14 = sphi %s749_s14, %s964_s14   ;;  %s699_s13 = sphi %s747_s13, %s963_s13   ;;  %s695_s12 = sphi %s745_s12, %s962_s12  }
   0xb   : > { %s84_s20 = sadd.s32 1, %s703_s14  ;;  %p91_p0 = scmp.ne.s32.totalorder %s703_s14, %s699_s13 }
   0xc   : > { %p92_p1 = scmp.eq.s32.totalorder %s715_s17, 0  ;;  %p97_p2 = scmp.ne.s32.totalorder %s699_s13, %s695_s12 }
   0xd   : > { %p783_p3 = scmp.eq.s32.totalorder %s441_s18, 0  ;;  %p123_p4 = scmp.eq.s32.totalorder %s441_s18, 1 }
   0xe   : > { %p93_p5 = por %p92_p1, %p91_p0  ;;  %p129_p6 = scmp.eq.s32.totalorder %s442_s19, 1 }
   0xf   : > { %p789_p7 = por %p783_p3, %p97_p2  ;;  %p793_p8 = por %p123_p4, %p91_p0 }
  0x10   : > { %p797_p9 = por %p129_p6, %p97_p2  ;;  %p443_p10 = scmp.ge.s32.totalorder %s715_s17, 1 }
  0x11   : > { %s953_s23 = scalar_select %p793_p8, 1, 0 }
  0x12   : > { %s954_s24 = scalar_select %p797_p9, 1, 0 }
  0x13   : > { %p136_p11 = scmp.lt.s32.totalorder %s715_s17, 3  ;;  %p515_p1 = scmp.lt.s32.totalorder %s715_s17, 2 }
  0x14   : > { %s158_s28 = sshll.u32 %s946_s1, 4  ;;  %s169_s4 = sand.u32 1, %s703_s14   ;;  %s159_s28 = int_to_ptr.vmem [resolvable:$true] %s158_s28 }
  0x15   : > { %p804_p13 = pnand %p443_p10, %p136_p11  ;;  %p814_p4 = pnand %p515_p1, %p93_p5 }
  0x16   : > { %s33_s5 = sadd.s32 1, %s711_s16  ;;  %s717_s6 = smov [#allocation2]  }
  0x17   : > { %p498_p0 = pneg %p804_p13  ;;  %s958_s0 = sld [smem:[#allocation14_spill]] }
  0x18   : > { %s584_s9 = scalar_lea.vmem %s159_s28, 16  ;;  %p592_p1 = scmp.lt.s32.totalorder %s159_s28, %s159_s28 }
  0x19   : > { %p820_p2 = pnand %p498_p0, %p783_p3  ;;  %p585_p5 = scmp.ne.s32.totalorder %s159_s28, %s584_s9 }
  0x1a   : > { %p593_p0 = scmp.lt.s32.totalorder %s584_s9, %s584_s9 }
  0x1b   : > { %p586_p6 = pneg %p820_p2 }
  0x1c   : > { %p594_p12 = por %p593_p0, %p592_p1 }
  0x1d   : > { %501 = dma.hbm_to_smem (!%p820_p2), %s958_s0, 16, %s717_s6, [#allocation5]  }
  0x1e   : > { %p587_p10 = pnand %p586_p6, %p585_p5 }
  0x20   : > { %p588_p11 = pneg %p587_p10 }
  0x22   : > { %p595_p9 = pnand %p594_p12, %p588_p11 }
  0x24   : > { %598 = shalt.err (!%p595_p9)
}
  0x25   : > { %s718_s10 = smov [#allocation7]   ;;  %p35_p8 = scmp.ge.s32.totalorder %s33_s5, 2 }
  0x26   : > { %504 = dma.vmem_to_smem (!%p820_p2), %s159_s28, 16, %s718_s10, [#allocation6]  }
  0x27   : > { %s447_s11 = sshll.u32 %s169_s4, 3  ;;  %s484_s18 = sshll.u32 %s711_s16, 7 }
  0x28   : > { %s968_s5 = smov (%p35_p8, %s33_s5), 0  ;;  %s180_s27 = scalar_lea.hbm %s947_s2, %s484_s18 }
  0x29   : > { %s79_s6 = ssub.s32 %s711_s16, %s968_s5  ;;  %s173_s7 = scalar_lea.vmem [#allocation8], %s447_s11 }
  0x2a   : > { %s181_s8 = sshll.u32 %s173_s7, 4  ;;  %p82_p9 = scmp.eq.s32.totalorder %s79_s6, 0  ;;  %s182_s8 = int_to_ptr.vmem [resolvable:$true] %s181_s8 }
  0x2b   : > { %s170_s9 = scalar_lea.sflag [#allocation3], %s169_s4  ;;  %p601_p12 = pneg %p814_p4 }
  0x2c   : > { %s846_s30 = scalar_select %p82_p9, %s703_s14, %s84_s20  }
  0x2d   : > { %s612_s28 = scalar_lea.vmem %s182_s8, 128  ;;  %s719_s10 = smov [#allocation8]  }
  0x2e   : > { %p613_p2 = scmp.ne.s32.totalorder %s182_s8, %s612_s28  ;;  %s617_s0 = sshll.u32 %s719_s10, 4  ;;  %s618_s0 = int_to_ptr.vmem [resolvable:$false] %s617_s0 }
  0x2f   : > { %s619_s19 = scalar_lea.vmem %s618_s0, 256  ;;  %p620_p6 = scmp.lt.s32.totalorder %s182_s8, %s618_s0 }
  0x30   : > { %p615_p8 = pnand %p613_p2, %p601_p12  ;;  %p621_p10 = scmp.lt.s32.totalorder %s619_s19, %s612_s28 }
  0x32   : > { %p616_p5 = pneg %p615_p8  ;;  %p622_p11 = por %p621_p10, %p620_p6 }
  0x34   : > { %p623_p1 = pnand %p622_p11, %p616_p5 }
  0x36   : > { %626 = shalt.err (!%p623_p1)
}
  0x37   : > { %s720_s11 = smov 32   ;;  %s721_s20 = smov 2  }
  0x38   : > { %508 = dma.hbm_to_vmem [thread:$0]  (!%p814_p4), %s180_s27, 128, %s182_s8, %s170_s9, %s720_s11, %s720_s11, %s721_s20  }
  0x39   : > { %193 = sbr.rel (%p804_p13) target bundleno = 118 (0x76), region = 32 }
  0x3e   : > { %678 = dma.done.wait (%p783_p3), [#allocation5], 16  }
  0x3f   : > { %680 = vsyncadd (%p783_p3), [#allocation5], 4294967280 }
  0x40   : > { %682 = dma.done.wait (%p783_p3), [#allocation6], 16  }
  0x41   : > { %684 = vsyncadd (%p783_p3), [#allocation6], 4294967280  ;;  %s863_s0 = sand.u32 1, %s699_s13  }
  0x42   : > { %s453_s25 = sshll.u32 %s863_s0, 3  ;;  %s204_s29 = scalar_lea.sflag [#allocation3], %s863_s0 }
  0x43   : > { %s207_s4 = scalar_lea.vmem [#allocation8], %s453_s25 }
  0x44   : > { %686 = dma.done.wait (%p789_p7), %s204_s29, 128  }
  0x45   : > { %688 = vsyncadd (%p789_p7), %s204_s29, 4294967168 }
  0x46   : > { %212 = sfence }
  0x47   : > { %s238_s18 = sld [smem:[#allocation2]]  ;;  %v231_v0 = vld [vmem:[%s207_s4] sm:$0x3]  ;;  %v455_v1 = vld [vmem:[%s207_s4 + $0x2] sm:$0x3]  ;;  %p959_p7 = scmp.ne.s32.totalorder %s953_s23, 0 }
  0x48   : > { %s458_s21 = sld [smem:[#allocation2 + $0x1]]  ;;  %v456_v2 = vld [vmem:[%s207_s4 + $0x4] sm:$0x3]  ;;  %v457_v4 = vld [vmem:[%s207_s4 + $0x6] sm:$0x3] }
  0x49   : > { %s459_s26 = sld [smem:[#allocation2 + $0x2]] }
  0x4a   : > { %s460_s27 = sld [smem:[#allocation2 + $0x3]] }
  0x4b   : > { %s873_s6 = sld [smem:[#allocation7]] }
  0x4c   : > { %s461_s7 = sld [smem:[#allocation2 + $0x4]] }
  0x4d   : > { %v239_v3 = vstv %s238_s18  ;;  %s462_s8 = sld [smem:[#allocation2 + $0x5]] }
  0x4e   : > { %v240_v5 = vmul.f32 %v239_v3, %v231_v0  ;;  %v242_v6 = vstv %s458_s21  ;;  %s463_s9 = sld [smem:[#allocation2 + $0x6]] }
  0x4f   : > { %v243_v7 = vmul.f32 %v455_v1, %v242_v6  ;;  %v246_v8 = vstv %s459_s26  ;;  %s464_s22 = sld [smem:[#allocation2 + $0x7]]  ;;  %s882_s26 = scalar_lea.vmem [#allocation9], %s453_s25 }
  0x50   : > { %v247_v9 = vmul.f32 %v456_v2, %v246_v8  ;;  %v250_v10 = vstv %s460_s27  ;;  %s875_s28 = sld [smem:[#allocation7 + $0x1]]  ;;  %s332_s25 = sshll.u32 %s882_s26, 4  ;;  %s891_s25 = int_to_ptr.vmem [resolvable:$true] %s332_s25 }
  0x51   : > { %v244_v11 = vadd.f32 %v243_v7, %v240_v5  ;;  %v251_v12 = vmul.f32 %v457_v4, %v250_v10  ;;  %s467_s10 = sld [smem:[#allocation2 + $0x8]]  ;;  %v254_v17 = vstv %s873_s6 }
  0x52   : > { %v258_v13 = vstv %s461_s7  ;;  %s468_s19 = sld [smem:[#allocation2 + $0x9]]  ;;  %s485_s7 = sshll.u32 %s707_s15, 7 }
  0x53   : > { %v248_v14 = vadd.f32 %v247_v9, %v244_v11  ;;  %v259_v15 = vmul.f32 %v258_v13, %v231_v0  ;;  %v261_v16 = vstv %s462_s8  ;;  %s469_s11 = sld [smem:[#allocation2 + $0xa]]  ;;  %s722_s15 = smov [#allocation9]  }
  0x54   : > { %v262_v18 = vmul.f32 %v455_v1, %v261_v16  ;;  %v265_v19 = vstv %s463_s9  ;;  %s470_s20 = sld [smem:[#allocation2 + $0xb]] }
  0x55   : > { %v252_v20 = vadd.f32 %v251_v12, %v248_v14  ;;  %v266_v21 = vmul.f32 %v456_v2, %v265_v19  ;;  %v269_v22 = vstv %s464_s22  ;;  %s878_s29 = sld [smem:[#allocation7 + $0x2]]  ;;  %s896_s22 = scalar_lea.hbm %s948_s3, %s485_s7 }
  0x56   : > { %v263_v23 = vadd.f32 %v262_v18, %v259_v15  ;;  %v270_v24 = vmul.f32 %v457_v4, %v269_v22  ;;  %s473_s4 = sld [smem:[#allocation2 + $0xc]]  ;;  %v273_v30 = vstv %s875_s28  ;;  %s318_s28 = scalar_lea.sflag [#allocation4], %s863_s0 }
  0x57   : > { %v255_v25 = vadd.f32 %v254_v17, %v252_v20  ;;  %v278_v26 = vstv %s467_s10  ;;  %s474_s18 = sld [smem:[#allocation2 + $0xd]]  ;;  %s627_s10 = scalar_lea.vmem %s891_s25, 128 }
  0x58   : > { %v267_v27 = vadd.f32 %v266_v21, %v263_v23  ;;  %v279_v28 = vmul.f32 %v278_v26, %v231_v0  ;;  %v281_v29 = vstv %s468_s19  ;;  %s475_s21 = sld [smem:[#allocation2 + $0xe]]  ;;  %p628_p3 = scmp.ne.s32.totalorder %s891_s25, %s627_s10 }
  0x59   : > { %256 = vst [vmem:[%s882_s26] sm:$0x3] %v255_v25  ;;  %v282_v31 = vmul.f32 %v455_v1, %v281_v29  ;;  %v285_v32 = vstv %s469_s11  ;;  %s476_s27 = sld [smem:[#allocation2 + $0xf]]  ;;  %s631_s19 = sshll.u32 %s722_s15, 4  ;;  %s632_s19 = int_to_ptr.vmem [resolvable:$false] %s631_s19 }
  0x5a   : > { %v271_v33 = vadd.f32 %v270_v24, %v267_v27  ;;  %v286_v34 = vmul.f32 %v456_v2, %v285_v32  ;;  %v289_v35 = vstv %s470_s20  ;;  %s477_s6 = sld [smem:[#allocation7 + $0x3]]  ;;  %p629_p13 = pnand %p628_p3, %p959_p7 }
  0x5b   : > { %v283_v36 = vadd.f32 %v282_v31, %v279_v28  ;;  %v290_v37 = vmul.f32 %v457_v4, %v289_v35  ;;  %v293_v43 = vstv %s878_s29  ;;  %s633_s11 = scalar_lea.vmem %s632_s19, 256  ;;  %p634_p0 = scmp.lt.s32.totalorder %s891_s25, %s632_s19 }
  0x5c   : > { %v274_v38 = vadd.f32 %v273_v30, %v271_v33  ;;  %v298_v39 = vstv %s473_s4  ;;  %p630_p4 = pneg %p629_p13  ;;  %p635_p9 = scmp.lt.s32.totalorder %s633_s11, %s627_s10 }
  0x5d   : > { %v287_v40 = vadd.f32 %v286_v34, %v283_v36  ;;  %v299_v41 = vmul.f32 %v298_v39, %v231_v0  ;;  %v301_v42 = vstv %s474_s18 }
  0x5e   : > { %466 = vst [vmem:[%s882_s26 + $0x2] sm:$0x3] %v274_v38  ;;  %v302_v44 = vmul.f32 %v455_v1, %v301_v42  ;;  %v305_v45 = vstv %s475_s21  ;;  %p636_p12 = por %p635_p9, %p634_p0 }
  0x5f   : > { %v291_v46 = vadd.f32 %v290_v37, %v287_v40  ;;  %v306_v47 = vmul.f32 %v456_v2, %v305_v45  ;;  %v309_v48 = vstv %s476_s27 }
  0x60   : > { %v303_v49 = vadd.f32 %v302_v44, %v299_v41  ;;  %v310_v50 = vmul.f32 %v457_v4, %v309_v48  ;;  %v313_v53 = vstv %s477_s6  ;;  %p637_p2 = pnand %p636_p12, %p630_p4 }
  0x61   : > { %v294_v51 = vadd.f32 %v293_v43, %v291_v46 }
  0x62   : > { %v307_v52 = vadd.f32 %v306_v47, %v303_v49 }
  0x63   : > { %472 = vst [vmem:[%s882_s26 + $0x4] sm:$0x3] %v294_v51 }
  0x64   : > { %v311_v54 = vadd.f32 %v310_v50, %v307_v52 }
  0x66   : > { %v314_v55 = vadd.f32 %v313_v53, %v311_v54 }
  0x68   : > { %478 = vst [vmem:[%s882_s26 + $0x6] sm:$0x3] %v314_v55 }
  0x69   : > { %640 = shalt.err (!%p637_p2)
}
  0x6a   : > { %s641_s20 = scalar_lea.hbm %s896_s22, 128  ;;  %s645_s18 = scalar_lea.hbm %s948_s3, 256 }
  0x6b   : > { %p642_p8 = scmp.ne.s32.totalorder %s896_s22, %s641_s20  ;;  %p646_p10 = scmp.lt.s32.totalorder %s896_s22, %s948_s3 }
  0x6c   : > { %p647_p11 = scmp.lt.s32.totalorder %s645_s18, %s641_s20 }
  0x6d   : > { %p643_p5 = pnand %p642_p8, %p959_p7 }
  0x6e   : > { %p648_p1 = por %p647_p11, %p646_p10 }
  0x6f   : > { %p644_p6 = pneg %p643_p5 }
  0x71   : > { %p649_p3 = pnand %p648_p1, %p644_p6 }
  0x73   : > { %652 = shalt.err (!%p649_p3)
}
  0x74   : > { %s723_s27 = smov 32   ;;  %s724_s6 = smov 2  }
  0x75   : > { %496 = dma.vmem_to_hbm [thread:$0]  (%p959_p7), %s891_s25, 128, %s896_s22, %s318_s28, %s723_s27, %s723_s27, %s724_s6  }
  0x76 PF: > { %s347_s7 = sand.u32 1, %s695_s12   ;;  %p960_p13 = scmp.ne.s32.totalorder %s954_s24, 0 }
  0x77   : > { %p961_p4 = scmp.ge.s32.totalorder %s715_s17, 2  ;;  %s348_s8 = scalar_lea.sflag [#allocation4], %s347_s7 }
  0x79   : > { %p510_p0 = pnand %p961_p4, %p960_p13 }
  0x7b   : > { %p511_p9 = pneg %p510_p0 }
  0x7d   : > { %690 = dma.done.wait (%p511_p9), %s348_s8, 128  }
  0x7e   : > { %692 = vsyncadd (%p511_p9), %s348_s8, 4294967168  ;;  %s21_s17 = sadd.s32 1, %s715_s17   ;;  %s962_s12 = smov %s699_s13 }
  0x7f   : > { %p18_p12 = scmp.ge.s32.totalorder %s21_s17, 4   ;;  %s963_s13 = smov %s703_s14 }
  0x80   : > { %s964_s14 = smov %s846_s30  ;;  %s965_s15 = smov %s711_s16 }
  0x81   : > { %s966_s16 = smov %s968_s5  ;;  %20 = sbr.rel (!%p18_p12) target bundleno = 10 (0xa), region = 93 }
  0x86   :  { %353 = vsyncpa [#allocation3], 1 }
  0x87   :  { %355 = vsyncpa [#allocation3 + $0x1], 1 }
  0x88   :  { %356 = vsyncpa [#allocation4], 1 }
  0x89   :  { %358 = vsyncpa [#allocation4 + $0x1], 1 }
  0x8a   :  { %359 = vsyncpa [#allocation5], 1 }
  0x8b   :  { %361 = vsyncpa [#allocation5 + $0x1], 1 }
  0x8c   :  { %362 = vsyncpa [#allocation6], 1 }
  0x8d   :  { %364 = vsyncpa [#allocation6 + $0x1], 1 }

</bundles_post_ra>
